<compile_context>
chip_gen: v6e
topology: v6e:2x2x1
jax: 0.10.0
libtpu: 0.0.40
codegen_flags: <defaults>
</compile_context>

<pallas_src>
import functools

import jax
import jax.numpy as jnp
from jax.experimental import pallas as pl
from jax.experimental.pallas import tpu as pltpu


def _round_up(x, m):
    return ((x + m - 1) // m) * m


def _pad2(a, shape, dtype):
    a = a.astype(dtype)
    if a.shape == shape:
        return a
    return jnp.zeros(shape, dtype).at[: a.shape[0], : a.shape[1]].set(a)


# ----------------------------------------------------------------------------
# Tiled linear (x @ W + b) kernel — qkv projection and output projection.
# ----------------------------------------------------------------------------
def _linear_kernel(x_ref, w_ref, b_ref, o_ref, acc_ref):
    @pl.when(pl.program_id(2) == 0)
    def _():
        acc_ref[...] = jnp.zeros_like(acc_ref)

    acc_ref[...] += jnp.dot(x_ref[...], w_ref[...],
                            preferred_element_type=jnp.float32)

    @pl.when(pl.program_id(2) == pl.num_programs(2) - 1)
    def _():
        o_ref[...] = (acc_ref[...] + b_ref[...]).astype(o_ref.dtype)


def linear(x, w, b, *, out_dtype=jnp.float32, tm=1024, tn=512, tk=512):
    """x: (M, D), w: (D, F), b: (F,) -> (M, F). bf16 operands, f32 accumulate."""
    M, D = x.shape
    F = w.shape[1]
    tm = min(tm, _round_up(M, 8))
    tk = min(tk, _round_up(D, 128))
    tn = min(tn, _round_up(F, 128))
    Mp, Dp, Fp = _round_up(M, tm), _round_up(D, tk), _round_up(F, tn)

    xp = _pad2(x, (Mp, Dp), jnp.bfloat16)
    wp = _pad2(w, (Dp, Fp), jnp.bfloat16)
    bp = _pad2(b.reshape(1, F), (1, Fp), jnp.float32)

    out = pl.pallas_call(
        _linear_kernel,
        out_shape=jax.ShapeDtypeStruct((Mp, Fp), out_dtype),
        grid=(Mp // tm, Fp // tn, Dp // tk),
        in_specs=[
            pl.BlockSpec((tm, tk), lambda i, j, k: (i, k)),
            pl.BlockSpec((tk, tn), lambda i, j, k: (k, j)),
            pl.BlockSpec((1, tn), lambda i, j, k: (0, j)),
        ],
        out_specs=pl.BlockSpec((tm, tn), lambda i, j, k: (i, j)),
        scratch_shapes=[pltpu.VMEM((tm, tn), jnp.float32)],
        compiler_params=pltpu.CompilerParams(
            dimension_semantics=("parallel", "parallel", "arbitrary")),
    )(xp, wp, bp)
    return out[:M, :F]


# ----------------------------------------------------------------------------
# Flash-style attention kernel with online softmax and decomposed rel-pos bias.
# q comes in pre-scaled by softmax scale; rel tables come pre-divided by it.
# ----------------------------------------------------------------------------
def _flash_attn_kernel(q_ref, k_ref, v_ref, *rest, H, W, nqh, tk, use_rel_pos):
    if use_rel_pos:
        (rh_ref, rw_ref, o_ref, m_scr, l_scr, acc_scr, bias_scr) = rest
    else:
        (o_ref, m_scr, l_scr, acc_scr) = rest

    kj = pl.program_id(2)

    @pl.when(kj == 0)
    def _init():
        m_scr[...] = jnp.full_like(m_scr, -jnp.inf)
        l_scr[...] = jnp.zeros_like(l_scr)
        acc_scr[...] = jnp.zeros_like(acc_scr)
        if use_rel_pos:
            # Expand the decomposed rel-pos bias for this query tile ONCE and
            # keep it dense in VMEM; every key step is then just a slice+add.
            q = q_ref[0]                                     # (tq, hd) bf16
            rw = rw_ref[...].astype(jnp.float32)             # (W, W, hd)
            bdt = bias_scr.dtype
            for g in range(nqh):                             # query height groups
                qg = q[g * W:(g + 1) * W, :]                 # (W, hd) bf16
                # rel_h projection on the MXU: (W, hd) x (hd, H) -> (W, H).
                relh_g = jax.lax.dot_general(
                    qg, rh_ref[g], (((1,), (1,)), ((), ())),
                    preferred_element_type=jnp.float32)
                # rel_w projection: diagonal-in-w contraction; bounded (W,W,hd)
                # intermediate per group (VPU mult + XLU lane reduce).
                relw_g = (qg.astype(jnp.float32)[:, None, :] * rw).sum(axis=-1)
                for j in range(H):
                    bias_scr[g * W:(g + 1) * W, j * W:(j + 1) * W] = (
                        relh_g[:, j:j + 1] + relw_g).astype(bdt)

    q = q_ref[0]                                             # (tq, hd) bf16 (scaled)
    kT = k_ref[0]                                            # (hd, tk) bf16
    v = v_ref[0]                                             # (tk, hd) bf16

    # scores: plain (tq, hd) @ (hd, tk) MXU contraction, f32 accumulation.
    s = jnp.dot(q, kT, preferred_element_type=jnp.float32)

    if use_rel_pos:
        start = kj * tk
        if tk % 128 == 0:
            start = pl.multiple_of(start, 128)
        s = s + bias_scr[:, pl.ds(start, tk)].astype(jnp.float32)

    # online softmax update
    m_prev = m_scr[...]
    m_new = jnp.maximum(m_prev, jnp.max(s, axis=-1, keepdims=True))
    alpha = jnp.exp(m_prev - m_new)
    p = jnp.exp(s - m_new)
    l_scr[...] = alpha * l_scr[...] + jnp.sum(p, axis=-1, keepdims=True)
    acc_scr[...] = alpha * acc_scr[...] + jnp.dot(
        p.astype(v.dtype), v, preferred_element_type=jnp.float32)
    m_scr[...] = m_new

    @pl.when(kj == pl.num_programs(2) - 1)
    def _finalize():
        o_ref[0] = (acc_scr[...] *
                    pl.reciprocal(l_scr[...], approx=True)).astype(o_ref.dtype)


def _pick_heights(H, W, max_rows):
    """Largest divisor `cand` of H with cand*W <= max_rows and (cand*W) % 8 == 0."""
    for cand in range(H, 0, -1):
        if H % cand:
            continue
        rows = cand * W
        if rows <= max_rows and rows % 8 == 0:
            return cand
    # Fall back to one full-extent tile (block == full dim is legal). Note this
    # ignores max_rows; acceptable for the small/aligned shapes exercised here.
    return H


def attention_core(q, kT, v, H, W, rel=None, *, tq_max=1024, tk_max=1024):
    """q, v: (B*heads, H*W, hd) bf16 (q pre-scaled); kT: (B*heads, hd, H*W) bf16.
    rel = (Rh, Rw) pre-divided by scale, or None."""
    BH, HW, hd = q.shape
    nqh = _pick_heights(H, W, tq_max)      # query heights per tile
    nkh = _pick_heights(H, W, tk_max)      # key heights per tile
    tq, tk = nqh * W, nkh * W
    n_q, n_kv = H // nqh, H // nkh

    q_spec = pl.BlockSpec((1, tq, hd), lambda b, qi, kj: (b, qi, 0))
    kT_spec = pl.BlockSpec((1, hd, tk), lambda b, qi, kj: (b, 0, kj))
    v_spec = pl.BlockSpec((1, tk, hd), lambda b, qi, kj: (b, kj, 0))
    in_specs = [q_spec, kT_spec, v_spec]
    args = [q, kT, v]
    scratch = [pltpu.VMEM((tq, 1), jnp.float32),     # m
               pltpu.VMEM((tq, 1), jnp.float32),     # l
               pltpu.VMEM((tq, hd), jnp.float32)]    # acc
    if rel is not None:
        Rh, Rw = rel                                  # (H, H, hd), (W, W, hd)
        in_specs += [
            pl.BlockSpec((nqh, H, hd), lambda b, qi, kj: (qi, 0, 0)),
            pl.BlockSpec((W, W, hd), lambda b, qi, kj: (0, 0, 0)),
        ]
        args += [Rh, Rw]
        # Dense expanded bias: f32 when small (tests), bf16 for large tiles to
        # stay inside v7x's scoped-VMEM budget.
        bias_dtype = jnp.float32 if tq * HW * 4 <= (4 << 20) else jnp.bfloat16
        scratch += [pltpu.VMEM((tq, HW), bias_dtype)]

    kernel = functools.partial(
        _flash_attn_kernel, H=H, W=W, nqh=nqh, tk=tk, use_rel_pos=rel is not None)

    # bf16 traffic: q read once, out written once, K and V re-streamed n_q times.
    cost = pl.CostEstimate(
        flops=4 * BH * HW * HW * hd,
        transcendentals=BH * HW * HW,
        bytes_accessed=int(2 * BH * HW * hd * (2 + 2 * n_q)))

    return pl.pallas_call(
        kernel,
        out_shape=jax.ShapeDtypeStruct((BH, HW, hd), jnp.bfloat16),
        grid=(BH, n_q, n_kv),
        in_specs=in_specs,
        out_specs=pl.BlockSpec((1, tq, hd), lambda b, qi, kj: (b, qi, 0)),
        scratch_shapes=scratch,
        compiler_params=pltpu.CompilerParams(
            dimension_semantics=("parallel", "parallel", "arbitrary")),
        cost_estimate=cost,
    )(*args)


# ----------------------------------------------------------------------------
# Glue: rel-pos table gather, reshapes, parameter bookkeeping (plain JAX).
# ----------------------------------------------------------------------------
def get_rel_pos_jax(q_size, k_size, rel_pos):
    max_rel_dist = 2 * max(q_size, k_size) - 1
    # TODO(synk): F.interpolate(mode='linear') resize branch not implemented;
    # not exercised because rel_pos tables are created at 2*size-1 length.
    assert rel_pos.shape[0] == max_rel_dist
    q_coords = jnp.arange(q_size)[:, None] * max(k_size / q_size, 1.0)
    k_coords = jnp.arange(k_size)[None, :] * max(q_size / k_size, 1.0)
    rel = q_coords - k_coords + (k_size - 1) * max(q_size / k_size, 1.0)
    return rel_pos[rel.astype(jnp.int32)]  # (q_size, k_size, head_dim)


def attention_forward(x, params, num_heads, use_rel_pos=True, *,
                      tq_max=1024, tk_max=1024):
    """Pallas implementation of Attention.forward. x: (B, H, W, dim)."""
    B, H, W, dim = x.shape
    hd = dim // num_heads
    scale = hd ** -0.5
    HW = H * W
    N = B * HW

    # Fold the softmax scale into the q-slice of the qkv projection so the
    # kernel never multiplies the (tq, tk) scores; rel tables are divided by
    # scale below to compensate.
    w_qkv = params["w_qkv"].at[:, :dim].multiply(scale)
    b_qkv = params["b_qkv"].at[:dim].multiply(scale)

    # qkv projection (tiled Pallas matmul, bf16 output to halve HBM traffic).
    qkv = linear(x.reshape(N, dim), w_qkv, b_qkv,
                 out_dtype=jnp.bfloat16)                      # (N, 3*dim)
    # TODO(synk): head-split/merge transposes remain in XLA; fusing them into
    # the attention kernel via BlockSpecs needs head_dim % 128 == 0.
    qkv = qkv.reshape(B, HW, 3, num_heads, hd)
    q = qkv[:, :, 0].transpose(0, 2, 1, 3).reshape(B * num_heads, HW, hd)
    kT = qkv[:, :, 1].transpose(0, 2, 3, 1).reshape(B * num_heads, hd, HW)
    v = qkv[:, :, 2].transpose(0, 2, 1, 3).reshape(B * num_heads, HW, hd)

    rel = None
    if use_rel_pos:
        inv = 1.0 / scale
        Rh = (get_rel_pos_jax(H, H, params["rel_pos_h"]) * inv).astype(jnp.bfloat16)
        Rw = (get_rel_pos_jax(W, W, params["rel_pos_w"]) * inv).astype(jnp.bfloat16)
        rel = (Rh, Rw)

    out = attention_core(q, kT, v, H, W, rel,
                         tq_max=tq_max, tk_max=tk_max)        # (B*nh, HW, hd)
    out = (out.reshape(B, num_heads, H, W, hd)
              .transpose(0, 2, 3, 1, 4)
              .reshape(N, dim))

    # output projection (tiled Pallas matmul).
    out = linear(out, params["w_proj"], params["b_proj"], out_dtype=jnp.float32)
    return out.reshape(B, H, W, dim)


# ----------------------------------------------------------------------------
# Pure-JAX f32 reference of the PyTorch forward (for correctness checking).
# ----------------------------------------------------------------------------
def reference_forward(x, params, num_heads, use_rel_pos=True):
    B, H, W, dim = x.shape
    hd = dim // num_heads
    scale = hd ** -0.5
    HW = H * W
    qkv = x.reshape(B, HW, dim) @ params["w_qkv"] + params["b_qkv"]
    qkv = (qkv.reshape(B, HW, 3, num_heads, hd)
              .transpose(2, 0, 3, 1, 4)
              .reshape(3, B * num_heads, HW, hd))
    q, k, v = qkv[0], qkv[1], qkv[2]
    attn = (q * scale) @ jnp.swapaxes(k, -2, -1)
    if use_rel_pos:
        Rh = get_rel_pos_jax(H, H, params["rel_pos_h"])
        Rw = get_rel_pos_jax(W, W, params["rel_pos_w"])
        r_q = q.reshape(B * num_heads, H, W, hd)
        rel_h = jnp.einsum("bhwc,hkc->bhwk", r_q, Rh)
        rel_w = jnp.einsum("bhwc,wkc->bhwk", r_q, Rw)
        attn = (attn.reshape(B * num_heads, H, W, H, W)
                + rel_h[:, :, :, :, None]
                + rel_w[:, :, :, None, :]).reshape(B * num_heads, HW, HW)
    attn = jax.nn.softmax(attn, axis=-1)
    out = attn @ v
    out = (out.reshape(B, num_heads, H, W, hd)
              .transpose(0, 2, 3, 1, 4)
              .reshape(B, H, W, dim))
    out = out.reshape(B * HW, dim) @ params["w_proj"] + params["b_proj"]
    return out.reshape(B, H, W, dim)


if __name__ == "__main__":
    def _run_case(key, B, H, W, dim, num_heads, use_rel_pos,
                  tq_max=1024, tk_max=1024, tol=5e-2):
        ks = jax.random.split(key, 7)
        hd = dim // num_heads
        x = jax.random.normal(ks[0], (B, H, W, dim), jnp.float32)
        params = dict(
            w_qkv=jax.random.normal(ks[1], (dim, 3 * dim), jnp.float32) * 0.05,
            b_qkv=jax.random.normal(ks[2], (3 * dim,), jnp.float32) * 0.02,
            w_proj=jax.random.normal(ks[3], (dim, dim), jnp.float32) * 0.05,
            b_proj=jax.random.normal(ks[4], (dim,), jnp.float32) * 0.02,
            rel_pos_h=jax.random.normal(ks[5], (2 * H - 1, hd), jnp.float32) * 0.02,
            rel_pos_w=jax.random.normal(ks[6], (2 * W - 1, hd), jnp.float32) * 0.02,
        )
        out = attention_forward(x, params, num_heads, use_rel_pos,
                                tq_max=tq_max, tk_max=tk_max)
        out = jax.block_until_ready(out)
        ref = reference_forward(x, params, num_heads, use_rel_pos)
        assert out.shape == (B, H, W, dim)
        max_err = float(jnp.max(jnp.abs(out - ref)))
        assert max_err < tol, f"max abs err {max_err}"

    root = jax.random.PRNGKey(0)
    k1, k2, k3 = jax.random.split(root, 3)
    # Small case matching the module (rel-pos on): single-tile path.
    _run_case(k1, B=2, H=8, W=8, dim=32, num_heads=4, use_rel_pos=True)
    # use_rel_pos=False path.
    _run_case(k2, B=2, H=8, W=8, dim=32, num_heads=4, use_rel_pos=False)
    # Moderately larger case forcing the multi-tile (query- and key-tiled)
    # online-softmax path: 2 query tiles x 2 key tiles per head.
    _run_case(k3, B=1, H=16, W=16, dim=64, num_heads=4, use_rel_pos=True,
              tq_max=128, tk_max=128)

    print("KERNEL_OK")
</pallas_src>

<mosaic_0001>
module attributes {stable_mosaic.version = 11 : i64} {
  func.func @_linear_kernel(%arg0: i32, %arg1: i32, %arg2: i32, %arg3: memref<128x128xbf16, #tpu.memory_space<vmem>>, %arg4: memref<128x128xbf16, #tpu.memory_space<vmem>>, %arg5: memref<1x128xf32, #tpu.memory_space<vmem>>, %arg6: memref<128x128xbf16, #tpu.memory_space<vmem>>, %arg7: memref<128x128xf32, #tpu.memory_space<vmem>>) attributes {dimension_semantics = [#tpu.dimension_semantics<parallel>, #tpu.dimension_semantics<parallel>, #tpu.dimension_semantics<arbitrary>], iteration_bounds = array<i64: 1, 1, 1>, scalar_prefetch = 0 : i64, scratch_operands = 1 : i64, tpu.core_type = #tpu.core_type<tc>, window_params = [{transform_indices = @transform_0, window_bounds = array<i64: 128, 128>}, {transform_indices = @transform_1, window_bounds = array<i64: 128, 128>}, {transform_indices = @transform_2, window_bounds = array<i64: 1, 128>}, {transform_indices = @transform_3, window_bounds = array<i64: 128, 128>}]} {
    %c0_i32 = arith.constant 0 : i32
    %0 = arith.cmpi eq, %arg2, %c0_i32 : i32
    %1 = arith.extui %0 : i1 to i32
    %c0_i32_0 = arith.constant 0 : i32
    %2 = arith.cmpi ne, %1, %c0_i32_0 : i32
    scf.if %2 {
      %cst_10 = arith.constant 0.000000e+00 : f32
      %12 = vector.broadcast %cst_10 : f32 to vector<128x128xf32>
      %c0_11 = arith.constant 0 : index
      %c0_12 = arith.constant 0 : index
      %13 = vector.load %arg7[%c0_11, %c0_12] : memref<128x128xf32, #tpu.memory_space<vmem>>, vector<128x128xf32>
      tpu.vector_store %arg7[%c0_11, %c0_12], %12 {strides = array<i32>} : memref<128x128xf32, #tpu.memory_space<vmem>>, vector<128x128xf32>,
    } else {
    }
    %c0 = arith.constant 0 : index
    %c0_1 = arith.constant 0 : index
    %3 = vector.load %arg7[%c0, %c0_1] : memref<128x128xf32, #tpu.memory_space<vmem>>, vector<128x128xf32>
    %c0_2 = arith.constant 0 : index
    %c0_3 = arith.constant 0 : index
    %4 = vector.load %arg3[%c0_2, %c0_3] : memref<128x128xbf16, #tpu.memory_space<vmem>>, vector<128x128xbf16>
    %c0_4 = arith.constant 0 : index
    %c0_5 = arith.constant 0 : index
    %5 = vector.load %arg4[%c0_4, %c0_5] : memref<128x128xbf16, #tpu.memory_space<vmem>>, vector<128x128xbf16>
    %cst = arith.constant dense<0.000000e+00> : vector<128x128xf32>
    %6 = tpu.matmul %4, %5, %cst {dimension_numbers = #tpu.dot_dimension_numbers<[1], [0], [0], [1], [0, 0, 1, 1], [], []>} : vector<128x128xbf16>, vector<128x128xbf16>, vector<128x128xf32> -> vector<128x128xf32>
    %7 = arith.addf %3, %6 : vector<128x128xf32>
    %c0_6 = arith.constant 0 : index
    %c0_7 = arith.constant 0 : index
    %8 = vector.load %arg7[%c0_6, %c0_7] : memref<128x128xf32, #tpu.memory_space<vmem>>, vector<128x128xf32>
    tpu.vector_store %arg7[%c0_6, %c0_7], %7 {strides = array<i32>} : memref<128x128xf32, #tpu.memory_space<vmem>>, vector<128x128xf32>,
    %c0_i32_8 = arith.constant 0 : i32
    %9 = arith.cmpi eq, %arg2, %c0_i32_8 : i32
    %10 = arith.extui %9 : i1 to i32
    %c0_i32_9 = arith.constant 0 : i32
    %11 = arith.cmpi ne, %10, %c0_i32_9 : i32
    scf.if %11 {
      %c0_10 = arith.constant 0 : index
      %c0_11 = arith.constant 0 : index
      %12 = vector.load %arg7[%c0_10, %c0_11] : memref<128x128xf32, #tpu.memory_space<vmem>>, vector<128x128xf32>
      %c0_12 = arith.constant 0 : index
      %c0_13 = arith.constant 0 : index
      %13 = vector.load %arg5[%c0_12, %c0_13] : memref<1x128xf32, #tpu.memory_space<vmem>>, vector<1x128xf32>
      %14 = vector.broadcast %13 : vector<1x128xf32> to vector<128x128xf32>
      %15 = arith.addf %12, %14 : vector<128x128xf32>
      %16 = arith.truncf %15 : vector<128x128xf32> to vector<128x128xbf16>
      %c0_14 = arith.constant 0 : index
      %c0_15 = arith.constant 0 : index
      %17 = vector.load %arg6[%c0_14, %c0_15] : memref<128x128xbf16, #tpu.memory_space<vmem>>, vector<128x128xbf16>
      tpu.vector_store %arg6[%c0_14, %c0_15], %16 {strides = array<i32>} : memref<128x128xbf16, #tpu.memory_space<vmem>>, vector<128x128xbf16>,
    } else {
    }
    return
  }
  func.func @transform_0(%arg0: i32, %arg1: i32, %arg2: i32) -> (i32, i32) {
    %c0_i32 = arith.constant 0 : i32
    return %arg0, %arg2 : i32, i32
  }
  func.func @transform_1(%arg0: i32, %arg1: i32, %arg2: i32) -> (i32, i32) {
    %c0_i32 = arith.constant 0 : i32
    return %arg2, %arg1 : i32, i32
  }
  func.func @transform_2(%arg0: i32, %arg1: i32, %arg2: i32) -> (i32, i32) {
    %c0_i32 = arith.constant 0 : i32
    %c0_i32_0 = arith.constant 0 : i32
    return %c0_i32, %arg1 : i32, i32
  }
  func.func @transform_3(%arg0: i32, %arg1: i32, %arg2: i32) -> (i32, i32) {
    %c0_i32 = arith.constant 0 : i32
    return %arg0, %arg1 : i32, i32
  }
}

</mosaic_0001>

<bundles_post_ra>
// kernel: tpu_custom_call.1
= control target key start
LH: loop header
LB: loop body
LE: loop exit
PB: predicated region body
PF: predicated region fallthrough
CT: control target
= control target key end

     0   :  { %8 = vsyncpa [#allocation4], 0  ;;  %s770_s0 = inlined_call_operand.hbm [shape: bf16[128,128], index: 0, kind: input, shape index: {}]   ;;  %s771_s1 = inlined_call_operand.hbm [shape: bf16[128,128], index: 1, kind: input, shape index: {}]   ;;  %s772_s2 = inlined_call_operand.vmem [shape: f32[1,128], index: 2, kind: input, shape index: {}]   ;;  %s773_s3 = inlined_call_operand.hbm [shape: bf16[128,128], index: 3, kind: output, shape index: {}]  }
   0x1   :  { %9 = vsyncpa [#allocation7], 0 }
   0x2   :  { %10 = vsyncpa [#allocation5], 0  ;;  %s724_s12 = smov [#allocation3]  }
   0x3   :  { %s16_s13 = sshll.u32 %s724_s12, 4  ;;  %s17_s13 = int_to_ptr.vmem [resolvable:$true] %s16_s13 }
   0x4   :  { %s666_s14 = scalar_lea.vmem %s17_s13, 1024  ;;  %p671_p1 = scmp.lt.s32.totalorder %s17_s13, %s17_s13 }
   0x5   :  { %p667_p0 = scmp.ne.s32.totalorder %s17_s13, %s666_s14  ;;  %p672_p2 = scmp.lt.s32.totalorder %s666_s14, %s666_s14 }
   0x7   :  { %p673_p3 = por %p672_p2, %p671_p1 }
   0x9   :  { %p674_p4 = pnand %p673_p3, %p667_p0 }
   0xb   :  { %677 = shalt.err (!%p674_p4)
}
   0xc   :  { %s725_s15 = smov 64   ;;  %s726_s16 = smov 4  }
   0xd   :  { %22 = dma.hbm_to_vmem [thread:$0]  %s770_s0, 1024, %s17_s13, [#allocation4], %s725_s15, %s725_s15, %s726_s16  }
   0xe   :  { %s727_s19 = smov [#allocation6]  }
   0xf   :  { %s28_s20 = sshll.u32 %s727_s19, 4  ;;  %s29_s20 = int_to_ptr.vmem [resolvable:$true] %s28_s20 }
  0x10   :  { %s686_s21 = scalar_lea.vmem %s29_s20, 1024  ;;  %p691_p6 = scmp.lt.s32.totalorder %s29_s20, %s29_s20 }
  0x11   :  { %p687_p5 = scmp.ne.s32.totalorder %s29_s20, %s686_s21  ;;  %p692_p7 = scmp.lt.s32.totalorder %s686_s21, %s686_s21 }
  0x13   :  { %p693_p8 = por %p692_p7, %p691_p6 }
  0x15   :  { %p694_p9 = pnand %p693_p8, %p687_p5 }
  0x17   :  { %697 = shalt.err (!%p694_p9)
}
  0x18   :  { %34 = dma.hbm_to_vmem [thread:$0]  %s771_s1, 1024, %s29_s20, [#allocation7], %s725_s15, %s725_s15, %s726_s16  }
  0x19   :  { %718 = dma.done.wait [#allocation4], 1024  }
  0x1a   :  { %719 = vsyncadd [#allocation4], 4294966272 }
  0x1b   :  { %720 = dma.done.wait [#allocation7], 1024  }
  0x1c   :  { %721 = vsyncadd [#allocation7], 4294966272  ;;  %v642_v0 = vld [vmem:[#allocation6 + $0x38] sm:$0xff]   ;;  %v643_v1 = vld [vmem:[#allocation6 + $0x30] sm:$0xff]  }
  0x1d   :  { %589 = vmatprep.subr.bf16.mxu0 %v642_v0  ;;  %621 = vmatprep.subr.bf16.mxu1 %v642_v0  ;;  %v644_v2 = vld [vmem:[#allocation6 + $0x28] sm:$0xff]   ;;  %v645_v3 = vld [vmem:[#allocation6 + $0x20] sm:$0xff]   ;;  %v646_v6 = vld [vmem:[#allocation6 + $0x18] sm:$0xff]  }
  0x1e   :  { %590 = vmatpush3.bf16.msra.mxu0 %v642_v0  ;;  %629 = vmatpush3.bf16.msra.mxu1 %v642_v0  ;;  %v650_v4 = vld [vmem:[#allocation3] sm:$0xff]   ;;  %v647_v7 = vld [vmem:[#allocation6 + $0x10] sm:$0xff]   ;;  %v648_v8 = vld [vmem:[#allocation6 + $0x8] sm:$0xff]  }
  0x1f   :  { %591 = vmatprep.subr.bf16.mxu0 %v643_v1  ;;  %622 = vmatprep.subr.bf16.mxu1 %v643_v1  ;;  %v651_v5 = vld [vmem:[#allocation3 + $0x20] sm:$0xff]   ;;  %v652_v10 = vld [vmem:[#allocation3 + $0x8] sm:$0xff]   ;;  %v654_v12 = vld [vmem:[#allocation3 + $0x10] sm:$0xff]  }
  0x20   :  { %605 = vmatprep.mubr.bf16.mxu0 %v650_v4  ;;  %613 = vmatprep.mubr.bf16.mxu1 %v651_v5  ;;  %v649_v9 = vld [vmem:[#allocation6] sm:$0xff]   ;;  %v653_v11 = vld [vmem:[#allocation3 + $0x28] sm:$0xff]   ;;  %v655_v13 = vld [vmem:[#allocation3 + $0x30] sm:$0xff]  }
  0x21   :  { %v656_v14 = vld [vmem:[#allocation3 + $0x18] sm:$0xff]   ;;  %v493_v18 = vld [vmem:[%s772_s2] ss:$0 sm:$0xff]  ;;  %s728_s2 = smov [#allocation8]  }
  0x22   :  { %592 = vmatpush3.bf16.msra.mxu0 %v643_v1  ;;  %630 = vmatpush3.bf16.msra.mxu1 %v643_v1  ;;  %v657_v15 = vld [vmem:[#allocation3 + $0x38] sm:$0xff]   ;;  %s464_s24 = sshll.u32 %s728_s2, 4  ;;  %s465_s24 = int_to_ptr.vmem [resolvable:$true] %s464_s24 }
  0x23   :  { %593 = vmatprep.subr.bf16.mxu0 %v644_v2  ;;  %623 = vmatprep.subr.bf16.mxu1 %v644_v2  ;;  %s698_s25 = scalar_lea.vmem %s465_s24, 1024  ;;  %p703_p11 = scmp.lt.s32.totalorder %s465_s24, %s465_s24 }
  0x24   :  { %p699_p10 = scmp.ne.s32.totalorder %s465_s24, %s698_s25  ;;  %p704_p12 = scmp.lt.s32.totalorder %s698_s25, %s698_s25 }
  0x26   :  { %594 = vmatpush3.bf16.msra.mxu0 %v644_v2  ;;  %631 = vmatpush3.bf16.msra.mxu1 %v644_v2  ;;  %p705_p13 = por %p704_p12, %p703_p11 }
  0x27   :  { %595 = vmatprep.subr.bf16.mxu0 %v645_v3  ;;  %624 = vmatprep.subr.bf16.mxu1 %v645_v3 }
  0x28   :  { %p706_p0 = pnand %p705_p13, %p699_p10 }
  0x2a   :  { %596 = vmatpush3.bf16.msra.mxu0 %v645_v3  ;;  %632 = vmatpush3.bf16.msra.mxu1 %v645_v3 }
  0x2b   :  { %597 = vmatprep.subr.bf16.mxu0 %v646_v6  ;;  %625 = vmatprep.subr.bf16.mxu1 %v646_v6 }
  0x2e   :  { %598 = vmatpush3.bf16.msra.mxu0 %v646_v6  ;;  %633 = vmatpush3.bf16.msra.mxu1 %v646_v6 }
  0x2f   :  { %599 = vmatprep.subr.bf16.mxu0 %v647_v7  ;;  %626 = vmatprep.subr.bf16.mxu1 %v647_v7 }
  0x32   :  { %600 = vmatpush3.bf16.msra.mxu0 %v647_v7  ;;  %634 = vmatpush3.bf16.msra.mxu1 %v647_v7 }
  0x33   :  { %601 = vmatprep.subr.bf16.mxu0 %v648_v8  ;;  %627 = vmatprep.subr.bf16.mxu1 %v648_v8 }
  0x36   :  { %602 = vmatpush3.bf16.msra.mxu0 %v648_v8  ;;  %635 = vmatpush3.bf16.msra.mxu1 %v648_v8 }
  0x37   :  { %603 = vmatprep.subr.bf16.mxu0 %v649_v9  ;;  %628 = vmatprep.subr.bf16.mxu1 %v649_v9 }
  0x3a   :  { %604 = vmatpush3.bf16.msra.mxu0 %v649_v9  ;;  %636 = vmatpush3.bf16.msra.mxu1 %v649_v9 }
  0x3d   :  { %606 = vmatmul.mubr.bf16.vlgmr.msra.gmra.mxu0 %v652_v10  ;;  %614 = vmatmul.mubr.bf16.vlgmr.msra.gmra.mxu1 %v653_v11 }
  0x3e   :  { %609 = vmatprep.mubr.bf16.mxu0 %v654_v12  ;;  %617 = vmatprep.mubr.bf16.mxu1 %v655_v13 }
  0x45   :  { %610 = vmatmul.mubr.bf16.gmra.mxu0 %v656_v14  ;;  %618 = vmatmul.mubr.bf16.gmra.mxu1 %v657_v15 }
  0xfd   :  { %v607_v16 = vpop.f32.mrf.mxu0  ;;  %v615_v17 = vpop.f32.mrf.mxu1 }
  0xfe   :  { %v365_v23 = vadd.f32 %v607_v16, %v493_v18  ;;  %v373_v24 = vadd.f32 %v615_v17, %v493_v18 }
  0xff   :  { %v242_v19 = vpop.f32.mrf.mxu0  ;;  %v274_v20 = vpop.f32.mrf.mxu1 }
 0x100   :  { %v363_v27 = vadd.f32 %v493_v18, %v242_v19  ;;  %v371_v28 = vadd.f32 %v493_v18, %v274_v20 }
 0x101   :  { %v608_v21 = vpop.f32.mrf.mxu0  ;;  %v616_v22 = vpop.f32.mrf.mxu1 }
 0x102   :  { %v366_v25 = vadd.f32 %v608_v21, %v493_v18  ;;  %v374_v26 = vadd.f32 %v616_v22, %v493_v18 }
 0x103   :  { %v245_v29 = vpop.f32.mrf.mxu0  ;;  %v277_v30 = vpop.f32.mrf.mxu1 }
 0x104   :  { %v534_v31 = vpack.c.bf16 %v366_v25, %v365_v23  ;;  %v554_v32 = vpack.c.bf16 %v374_v26, %v373_v24  ;;  %v364_v33 = vadd.f32 %v493_v18, %v245_v29  ;;  %v372_v34 = vadd.f32 %v493_v18, %v277_v30 }
 0x105   :  { %v611_v35 = vpop.f32.mrf.mxu0  ;;  %v619_v36 = vpop.f32.mrf.mxu1 }
 0x106   :  { %566 = vst [vmem:[#allocation8 + $0x8] sm:$0xff] %v534_v31   ;;  %570 = vst [vmem:[#allocation8 + $0x28] sm:$0xff] %v554_v32   ;;  %v529_v37 = vpack.c.bf16 %v364_v33, %v363_v27  ;;  %v549_v38 = vpack.c.bf16 %v372_v34, %v371_v28  ;;  %v369_v43 = vadd.f32 %v611_v35, %v493_v18 }
 0x107   :  { %v258_v39 = vpop.f32.mrf.mxu0  ;;  %v290_v40 = vpop.f32.mrf.mxu1  ;;  %v377_v44 = vadd.f32 %v619_v36, %v493_v18 }
 0x108   :  { %530 = vst [vmem:[#allocation8] sm:$0xff] %v529_v37   ;;  %569 = vst [vmem:[#allocation8 + $0x20] sm:$0xff] %v549_v38   ;;  %v367_v47 = vadd.f32 %v493_v18, %v258_v39  ;;  %v375_v48 = vadd.f32 %v493_v18, %v290_v40 }
 0x109   :  { %v612_v41 = vpop.f32.mrf.mxu0  ;;  %v620_v42 = vpop.f32.mrf.mxu1 }
 0x10a   :  { %v370_v45 = vadd.f32 %v612_v41, %v493_v18  ;;  %v378_v46 = vadd.f32 %v620_v42, %v493_v18 }
 0x10b   :  { %v261_v49 = vpop.f32.mrf.mxu0  ;;  %v293_v50 = vpop.f32.mrf.mxu1 }
 0x10c   :  { %v544_v51 = vpack.c.bf16 %v370_v45, %v369_v43  ;;  %v564_v52 = vpack.c.bf16 %v378_v46, %v377_v44  ;;  %v368_v53 = vadd.f32 %v493_v18, %v261_v49  ;;  %v376_v54 = vadd.f32 %v493_v18, %v293_v50 }
 0x10e   :  { %568 = vst [vmem:[#allocation8 + $0x18] sm:$0xff] %v544_v51   ;;  %572 = vst [vmem:[#allocation8 + $0x38] sm:$0xff] %v564_v52   ;;  %v539_v55 = vpack.c.bf16 %v368_v53, %v367_v47  ;;  %v559_v56 = vpack.c.bf16 %v376_v54, %v375_v48 }
 0x110   :  { %567 = vst [vmem:[#allocation8 + $0x10] sm:$0xff] %v539_v55   ;;  %571 = vst [vmem:[#allocation8 + $0x30] sm:$0xff] %v559_v56  }
 0x111   :  { %709 = shalt.err (!%p706_p0)
}
 0x112   :  { %470 = dma.vmem_to_hbm [thread:$0]  %s465_s24, 1024, %s773_s3, [#allocation5], %s725_s15, %s725_s15, %s726_s16  }
 0x113   :  { %722 = dma.done.wait [#allocation5], 1024  }
 0x114   :  { %723 = vsyncadd [#allocation5], 4294966272 }
 0x115   :  { %474 = vsyncpa [#allocation4], 1 }
 0x116   :  { %475 = vsyncpa [#allocation7], 1 }
 0x117   :  { %476 = vsyncpa [#allocation5], 1 }

</bundles_post_ra>
